<compile_context>
chip_gen: v5e
topology: v5e:2x2
jax: 0.10.0
libtpu: 0.0.40
codegen_flags: <defaults>
</compile_context>

<pallas_src>
import functools

import jax
import jax.numpy as jnp
import numpy as np
from jax.experimental import pallas as pl
from jax.experimental.pallas import tpu as pltpu

# ----------------------------- configuration --------------------------------
IN_CHANNELS = 4
OUT_CHANNELS = 8
KERNEL_SIZE = 3
STRIDE = 1
PADDING = 1
DOWN = True          # Conv2d with reflect padding (ConvTranspose2d not implemented)
USE_ACT = True       # ReLU
USE_IN = True        # InstanceNorm2d (affine=False, eps=1e-5)
EPS = 1e-5
LANE = 128


def _round_up(v, m):
    return (v + m - 1) // m * m


# ------------------------------- Pallas kernel ------------------------------
def _convblock_kernel(x_ref, w_ref, aux_ref, o_ref, col_ref, *,
                      use_in, use_act, n, c_in, kh, kw, wp, l_out, inv_cnt):
    # x_ref:   (N, C_in, L_in)          bf16  flattened reflect-padded inputs
    # w_ref:   (C_out, KH*KW*C_in)      bf16  taps stacked along K
    # aux_ref: (1, L_out) f32 mask      (use_in=True)  | (C_out, 1) f32 bias (use_in=False)
    # o_ref:   (N, C_out, L_out)        f32   "wide" (padded-row-stride) outputs
    # col_ref: (KH*KW*C_in, N*L_out)    bf16  VMEM scratch: stacked shifted views

    # 1) Build the K-stacked operand from statically lane-shifted views of the
    #    flattened padded input (stride-1 conv: output flat t needs input t+off).
    for di in range(kh):
        for dj in range(kw):
            off = di * wp + dj
            row0 = (di * kw + dj) * c_in
            for i in range(n):
                col_ref[row0:row0 + c_in, i * l_out:(i + 1) * l_out] = \
                    x_ref[i, :, off:off + l_out]

    # 2) Single fused MXU matmul over K = KH*KW*C_in (bf16 x bf16 -> f32 acc).
    acc = jnp.dot(w_ref[...], col_ref[...],
                  preferred_element_type=jnp.float32)        # (C_out, N*L_out)

    if use_in:
        m = aux_ref[...]                                      # (1, L_out) validity mask
    else:
        b = aux_ref[...]                                      # (C_out, 1) bias

    # 3) Per-image InstanceNorm (two-pass, masked) / bias, ReLU, per-image store.
    for i in range(n):
        a = acc[:, i * l_out:(i + 1) * l_out]                 # (C_out, L_out) f32
        if use_in:
            # Bias is exactly cancelled by the mean subtraction -> skipped.
            mean = jnp.sum(a * m, axis=1, keepdims=True) * inv_cnt
            cen = a - mean
            var = jnp.sum(cen * cen * m, axis=1, keepdims=True) * inv_cnt
            y = cen * jax.lax.rsqrt(var + EPS)
        else:
            y = a + b                                         # broadcast bias
        if use_act:
            y = jnp.maximum(y, 0.0)                           # ReLU
        o_ref[i] = y.astype(o_ref.dtype)


# --------------------------------- wrapper -----------------------------------
def conv_block_forward(x, weight, bias, *, use_in=USE_IN, use_act=USE_ACT,
                       stride=STRIDE, pad=PADDING):
    """x: (N, C_in, H, W) NCHW; weight: (C_out, C_in, KH, KW); bias: (C_out,)."""
    assert stride == 1, "TODO(synk): only the stride-1 Conv2d path is implemented"
    n, c_in, h, w = x.shape
    c_out, _, kh, kw = weight.shape

    hp, wp = h + 2 * pad, w + 2 * pad
    ho, wo = hp - kh + 1, wp - kw + 1

    # Row stride chosen so one image's wide output (ho*wp_row) is LANE-aligned
    # -> dense stores, per-image lane segments are 128-aligned, and the
    # post-kernel crop is reshape + one contiguous slice. Fall back to wp if
    # that would inflate the width too much.
    wp_row = wp
    while (ho * wp_row) % LANE and wp_row < wp + 16:
        wp_row += 1
    if (ho * wp_row) % LANE:
        wp_row = wp
    l_img = ho * wp_row                       # flat wide-output length per image
    l_out = _round_up(l_img, LANE)
    max_off = (kh - 1) * wp_row + (kw - 1)
    l_in = _round_up(max(hp * wp_row, l_out + max_off), LANE)

    # Reflect-pad, widen rows to wp_row, flatten spatial per channel, cast bf16.
    # (All of this fuses into one XLA pass under jit.)
    xp = jnp.pad(x, ((0, 0), (0, 0), (pad, pad), (pad, pad)), mode="reflect")
    if wp_row > wp:
        xp = jnp.pad(xp, ((0, 0), (0, 0), (0, 0), (0, wp_row - wp)))
    xf = xp.reshape(n, c_in, hp * wp_row)
    xf = jnp.pad(xf, ((0, 0), (0, 0), (0, l_in - hp * wp_row)))
    xf = xf.astype(jnp.bfloat16)

    # Taps stacked along K: w2d[co, (di*kw+dj)*c_in + ci] = weight[co, ci, di, dj].
    w2d = jnp.transpose(weight, (0, 2, 3, 1)).reshape(c_out, kh * kw * c_in)
    w2d = w2d.astype(jnp.bfloat16)

    if use_in:
        # Validity mask over one image's wide lane axis (shared by all images):
        # lane t -> (p, q) = divmod(t, wp_row); valid iff t < l_img and q < wo.
        t = np.arange(l_out)
        valid = (t < l_img) & ((t % wp_row) < wo)
        aux = jnp.asarray(valid.reshape(1, l_out), dtype=jnp.float32)
        aux_spec = pl.BlockSpec((1, l_out), lambda s: (0, 0))
        inv_cnt = 1.0 / float(ho * wo)
    else:
        aux = bias.reshape(c_out, 1).astype(jnp.float32)
        aux_spec = pl.BlockSpec((c_out, 1), lambda s: (0, 0))
        inv_cnt = 1.0  # unused

    kernel = functools.partial(
        _convblock_kernel, use_in=use_in, use_act=use_act, n=n, c_in=c_in,
        kh=kh, kw=kw, wp=wp_row, l_out=l_out, inv_cnt=inv_cnt)

    out_wide = pl.pallas_call(
        kernel,
        out_shape=jax.ShapeDtypeStruct((n, c_out, l_out), jnp.float32),
        grid_spec=pltpu.PrefetchScalarGridSpec(
            num_scalar_prefetch=0,
            grid=(1,),                        # batch folded into lanes: one step
            in_specs=[
                pl.BlockSpec((n, c_in, l_in), lambda s: (0, 0, 0)),
                pl.BlockSpec((c_out, kh * kw * c_in), lambda s: (0, 0)),
                aux_spec,
            ],
            out_specs=pl.BlockSpec((n, c_out, l_out), lambda s: (0, 0, 0)),
            scratch_shapes=[pltpu.VMEM((kh * kw * c_in, n * l_out), jnp.bfloat16)],
        ),
        compiler_params=pltpu.CompilerParams(
            dimension_semantics=("arbitrary",)),
    )(xf, w2d, aux)

    # Crop the padded-row-stride columns (reshape + one contiguous slice).
    out = out_wide[:, :, :l_img].reshape(n, c_out, ho, wp_row)[:, :, :, :wo]
    return out.astype(x.dtype)


conv_block_forward_jit = jax.jit(
    conv_block_forward, static_argnames=("use_in", "use_act", "stride", "pad"))


# ------------------------------ pure-JAX reference ---------------------------
def conv_block_reference(x, weight, bias, *, use_in=USE_IN, use_act=USE_ACT,
                         stride=STRIDE, pad=PADDING):
    xp = jnp.pad(x, ((0, 0), (0, 0), (pad, pad), (pad, pad)), mode="reflect")
    y = jax.lax.conv_general_dilated(
        xp, weight, window_strides=(stride, stride), padding="VALID",
        dimension_numbers=("NCHW", "OIHW", "NCHW"))
    y = y + bias.reshape(1, -1, 1, 1)
    if use_in:
        mean = jnp.mean(y, axis=(2, 3), keepdims=True)
        var = jnp.mean((y - mean) ** 2, axis=(2, 3), keepdims=True)
        y = (y - mean) * jax.lax.rsqrt(var + EPS)
    if use_act:
        y = jnp.maximum(y, 0.0)
    return y


# ----------------------------------- main ------------------------------------
if __name__ == "__main__":
    key = jax.random.PRNGKey(0)
    kx, kw_, kb = jax.random.split(key, 3)

    N, H, W = 2, 16, 16
    x = jax.random.normal(kx, (N, IN_CHANNELS, H, W), dtype=jnp.float32)
    fan_in = IN_CHANNELS * KERNEL_SIZE * KERNEL_SIZE
    weight = jax.random.normal(
        kw_, (OUT_CHANNELS, IN_CHANNELS, KERNEL_SIZE, KERNEL_SIZE),
        dtype=jnp.float32) * (1.0 / np.sqrt(fan_in))
    bias = jax.random.normal(kb, (OUT_CHANNELS,), dtype=jnp.float32) * 0.1

    # Reference with bf16-quantized operands: tight check that catches indexing
    # bugs independent of the bf16-cast error (review correctness concern).
    xq = x.astype(jnp.bfloat16).astype(jnp.float32)
    wq = weight.astype(jnp.bfloat16).astype(jnp.float32)

    for use_in in (True, False):      # InstanceNorm path and plain Conv+ReLU path
        out = jax.block_until_ready(
            conv_block_forward_jit(x, weight, bias, use_in=use_in, use_act=True))
        ref = jax.block_until_ready(
            conv_block_reference(x, weight, bias, use_in=use_in, use_act=True))
        np.testing.assert_allclose(np.asarray(out), np.asarray(ref),
                                   rtol=5e-2, atol=5e-2)
        refq = jax.block_until_ready(
            conv_block_reference(xq, wq, bias, use_in=use_in, use_act=True))
        np.testing.assert_allclose(np.asarray(out), np.asarray(refq),
                                   rtol=5e-3, atol=5e-3)

    print("KERNEL_OK")
</pallas_src>

<mosaic_0001>
module attributes {stable_mosaic.version = 11 : i64} {
  func.func @_convblock_kernel(%arg0: i32, %arg1: memref<2x4x512xbf16, #tpu.memory_space<vmem>>, %arg2: memref<8x36xbf16, #tpu.memory_space<vmem>>, %arg3: memref<1x384xf32, #tpu.memory_space<vmem>>, %arg4: memref<2x8x384xf32, #tpu.memory_space<vmem>>, %arg5: memref<36x768xbf16, #tpu.memory_space<vmem>>) attributes {dimension_semantics = [#tpu.dimension_semantics<arbitrary>], iteration_bounds = array<i64: 1>, scalar_prefetch = 0 : i64, scratch_operands = 1 : i64, tpu.core_type = #tpu.core_type<tc>, window_params = [{pipeline_mode = #tpu.pipeline_mode<synchronous>, transform_indices = @transform_0, window_bounds = array<i64: 2, 4, 512>}, {pipeline_mode = #tpu.pipeline_mode<synchronous>, transform_indices = @transform_1, window_bounds = array<i64: 8, 36>}, {pipeline_mode = #tpu.pipeline_mode<synchronous>, transform_indices = @transform_2, window_bounds = array<i64: 1, 384>}, {pipeline_mode = #tpu.pipeline_mode<synchronous>, transform_indices = @transform_3, window_bounds = array<i64: 2, 8, 384>}]} {
    %c0 = arith.constant 0 : index
    %c0_0 = arith.constant 0 : index
    %c0_1 = arith.constant 0 : index
    %0 = vector.load %arg1[%c0, %c0_0, %c0_1] : memref<2x4x512xbf16, #tpu.memory_space<vmem>>, vector<1x4x384xbf16>
    %1 = vector.shape_cast %0 : vector<1x4x384xbf16> to vector<4x384xbf16>
    %c0_2 = arith.constant 0 : index
    %c0_3 = arith.constant 0 : index
    %2 = vector.load %arg5[%c0_2, %c0_3] : memref<36x768xbf16, #tpu.memory_space<vmem>>, vector<4x384xbf16>
    tpu.vector_store %arg5[%c0_2, %c0_3], %1 {strides = array<i32>} : memref<36x768xbf16, #tpu.memory_space<vmem>>, vector<4x384xbf16>,
    %c1 = arith.constant 1 : index
    %c0_4 = arith.constant 0 : index
    %c0_5 = arith.constant 0 : index
    %3 = vector.load %arg1[%c1, %c0_4, %c0_5] : memref<2x4x512xbf16, #tpu.memory_space<vmem>>, vector<1x4x384xbf16>
    %4 = vector.shape_cast %3 : vector<1x4x384xbf16> to vector<4x384xbf16>
    %c0_6 = arith.constant 0 : index
    %c384 = arith.constant 384 : index
    %5 = vector.load %arg5[%c0_6, %c384] : memref<36x768xbf16, #tpu.memory_space<vmem>>, vector<4x384xbf16>
    tpu.vector_store %arg5[%c0_6, %c384], %4 {strides = array<i32>} : memref<36x768xbf16, #tpu.memory_space<vmem>>, vector<4x384xbf16>,
    %c0_7 = arith.constant 0 : index
    %c0_8 = arith.constant 0 : index
    %c1_9 = arith.constant 1 : index
    %6 = vector.load %arg1[%c0_7, %c0_8, %c1_9] : memref<2x4x512xbf16, #tpu.memory_space<vmem>>, vector<1x4x384xbf16>
    %7 = vector.shape_cast %6 : vector<1x4x384xbf16> to vector<4x384xbf16>
    %c4 = arith.constant 4 : index
    %c0_10 = arith.constant 0 : index
    %8 = vector.load %arg5[%c4, %c0_10] : memref<36x768xbf16, #tpu.memory_space<vmem>>, vector<4x384xbf16>
    tpu.vector_store %arg5[%c4, %c0_10], %7 {strides = array<i32>} : memref<36x768xbf16, #tpu.memory_space<vmem>>, vector<4x384xbf16>,
    %c1_11 = arith.constant 1 : index
    %c0_12 = arith.constant 0 : index
    %c1_13 = arith.constant 1 : index
    %9 = vector.load %arg1[%c1_11, %c0_12, %c1_13] : memref<2x4x512xbf16, #tpu.memory_space<vmem>>, vector<1x4x384xbf16>
    %10 = vector.shape_cast %9 : vector<1x4x384xbf16> to vector<4x384xbf16>
    %c4_14 = arith.constant 4 : index
    %c384_15 = arith.constant 384 : index
    %11 = vector.load %arg5[%c4_14, %c384_15] : memref<36x768xbf16, #tpu.memory_space<vmem>>, vector<4x384xbf16>
    tpu.vector_store %arg5[%c4_14, %c384_15], %10 {strides = array<i32>} : memref<36x768xbf16, #tpu.memory_space<vmem>>, vector<4x384xbf16>,
    %c0_16 = arith.constant 0 : index
    %c0_17 = arith.constant 0 : index
    %c2 = arith.constant 2 : index
    %12 = vector.load %arg1[%c0_16, %c0_17, %c2] : memref<2x4x512xbf16, #tpu.memory_space<vmem>>, vector<1x4x384xbf16>
    %13 = vector.shape_cast %12 : vector<1x4x384xbf16> to vector<4x384xbf16>
    %c8 = arith.constant 8 : index
    %c0_18 = arith.constant 0 : index
    %14 = vector.load %arg5[%c8, %c0_18] : memref<36x768xbf16, #tpu.memory_space<vmem>>, vector<4x384xbf16>
    tpu.vector_store %arg5[%c8, %c0_18], %13 {strides = array<i32>} : memref<36x768xbf16, #tpu.memory_space<vmem>>, vector<4x384xbf16>,
    %c1_19 = arith.constant 1 : index
    %c0_20 = arith.constant 0 : index
    %c2_21 = arith.constant 2 : index
    %15 = vector.load %arg1[%c1_19, %c0_20, %c2_21] : memref<2x4x512xbf16, #tpu.memory_space<vmem>>, vector<1x4x384xbf16>
    %16 = vector.shape_cast %15 : vector<1x4x384xbf16> to vector<4x384xbf16>
    %c8_22 = arith.constant 8 : index
    %c384_23 = arith.constant 384 : index
    %17 = vector.load %arg5[%c8_22, %c384_23] : memref<36x768xbf16, #tpu.memory_space<vmem>>, vector<4x384xbf16>
    tpu.vector_store %arg5[%c8_22, %c384_23], %16 {strides = array<i32>} : memref<36x768xbf16, #tpu.memory_space<vmem>>, vector<4x384xbf16>,
    %c0_24 = arith.constant 0 : index
    %c0_25 = arith.constant 0 : index
    %c24 = arith.constant 24 : index
    %18 = vector.load %arg1[%c0_24, %c0_25, %c24] : memref<2x4x512xbf16, #tpu.memory_space<vmem>>, vector<1x4x384xbf16>
    %19 = vector.shape_cast %18 : vector<1x4x384xbf16> to vector<4x384xbf16>
    %c12 = arith.constant 12 : index
    %c0_26 = arith.constant 0 : index
    %20 = vector.load %arg5[%c12, %c0_26] : memref<36x768xbf16, #tpu.memory_space<vmem>>, vector<4x384xbf16>
    tpu.vector_store %arg5[%c12, %c0_26], %19 {strides = array<i32>} : memref<36x768xbf16, #tpu.memory_space<vmem>>, vector<4x384xbf16>,
    %c1_27 = arith.constant 1 : index
    %c0_28 = arith.constant 0 : index
    %c24_29 = arith.constant 24 : index
    %21 = vector.load %arg1[%c1_27, %c0_28, %c24_29] : memref<2x4x512xbf16, #tpu.memory_space<vmem>>, vector<1x4x384xbf16>
    %22 = vector.shape_cast %21 : vector<1x4x384xbf16> to vector<4x384xbf16>
    %c12_30 = arith.constant 12 : index
    %c384_31 = arith.constant 384 : index
    %23 = vector.load %arg5[%c12_30, %c384_31] : memref<36x768xbf16, #tpu.memory_space<vmem>>, vector<4x384xbf16>
    tpu.vector_store %arg5[%c12_30, %c384_31], %22 {strides = array<i32>} : memref<36x768xbf16, #tpu.memory_space<vmem>>, vector<4x384xbf16>,
    %c0_32 = arith.constant 0 : index
    %c0_33 = arith.constant 0 : index
    %c25 = arith.constant 25 : index
    %24 = vector.load %arg1[%c0_32, %c0_33, %c25] : memref<2x4x512xbf16, #tpu.memory_space<vmem>>, vector<1x4x384xbf16>
    %25 = vector.shape_cast %24 : vector<1x4x384xbf16> to vector<4x384xbf16>
    %c16 = arith.constant 16 : index
    %c0_34 = arith.constant 0 : index
    %26 = vector.load %arg5[%c16, %c0_34] : memref<36x768xbf16, #tpu.memory_space<vmem>>, vector<4x384xbf16>
    tpu.vector_store %arg5[%c16, %c0_34], %25 {strides = array<i32>} : memref<36x768xbf16, #tpu.memory_space<vmem>>, vector<4x384xbf16>,
    %c1_35 = arith.constant 1 : index
    %c0_36 = arith.constant 0 : index
    %c25_37 = arith.constant 25 : index
    %27 = vector.load %arg1[%c1_35, %c0_36, %c25_37] : memref<2x4x512xbf16, #tpu.memory_space<vmem>>, vector<1x4x384xbf16>
    %28 = vector.shape_cast %27 : vector<1x4x384xbf16> to vector<4x384xbf16>
    %c16_38 = arith.constant 16 : index
    %c384_39 = arith.constant 384 : index
    %29 = vector.load %arg5[%c16_38, %c384_39] : memref<36x768xbf16, #tpu.memory_space<vmem>>, vector<4x384xbf16>
    tpu.vector_store %arg5[%c16_38, %c384_39], %28 {strides = array<i32>} : memref<36x768xbf16, #tpu.memory_space<vmem>>, vector<4x384xbf16>,
    %c0_40 = arith.constant 0 : index
    %c0_41 = arith.constant 0 : index
    %c26 = arith.constant 26 : index
    %30 = vector.load %arg1[%c0_40, %c0_41, %c26] : memref<2x4x512xbf16, #tpu.memory_space<vmem>>, vector<1x4x384xbf16>
    %31 = vector.shape_cast %30 : vector<1x4x384xbf16> to vector<4x384xbf16>
    %c20 = arith.constant 20 : index
    %c0_42 = arith.constant 0 : index
    %32 = vector.load %arg5[%c20, %c0_42] : memref<36x768xbf16, #tpu.memory_space<vmem>>, vector<4x384xbf16>
    tpu.vector_store %arg5[%c20, %c0_42], %31 {strides = array<i32>} : memref<36x768xbf16, #tpu.memory_space<vmem>>, vector<4x384xbf16>,
    %c1_43 = arith.constant 1 : index
    %c0_44 = arith.constant 0 : index
    %c26_45 = arith.constant 26 : index
    %33 = vector.load %arg1[%c1_43, %c0_44, %c26_45] : memref<2x4x512xbf16, #tpu.memory_space<vmem>>, vector<1x4x384xbf16>
    %34 = vector.shape_cast %33 : vector<1x4x384xbf16> to vector<4x384xbf16>
    %c20_46 = arith.constant 20 : index
    %c384_47 = arith.constant 384 : index
    %35 = vector.load %arg5[%c20_46, %c384_47] : memref<36x768xbf16, #tpu.memory_space<vmem>>, vector<4x384xbf16>
    tpu.vector_store %arg5[%c20_46, %c384_47], %34 {strides = array<i32>} : memref<36x768xbf16, #tpu.memory_space<vmem>>, vector<4x384xbf16>,
    %c0_48 = arith.constant 0 : index
    %c0_49 = arith.constant 0 : index
    %c48 = arith.constant 48 : index
    %36 = vector.load %arg1[%c0_48, %c0_49, %c48] : memref<2x4x512xbf16, #tpu.memory_space<vmem>>, vector<1x4x384xbf16>
    %37 = vector.shape_cast %36 : vector<1x4x384xbf16> to vector<4x384xbf16>
    %c24_50 = arith.constant 24 : index
    %c0_51 = arith.constant 0 : index
    %38 = vector.load %arg5[%c24_50, %c0_51] : memref<36x768xbf16, #tpu.memory_space<vmem>>, vector<4x384xbf16>
    tpu.vector_store %arg5[%c24_50, %c0_51], %37 {strides = array<i32>} : memref<36x768xbf16, #tpu.memory_space<vmem>>, vector<4x384xbf16>,
    %c1_52 = arith.constant 1 : index
    %c0_53 = arith.constant 0 : index
    %c48_54 = arith.constant 48 : index
    %39 = vector.load %arg1[%c1_52, %c0_53, %c48_54] : memref<2x4x512xbf16, #tpu.memory_space<vmem>>, vector<1x4x384xbf16>
    %40 = vector.shape_cast %39 : vector<1x4x384xbf16> to vector<4x384xbf16>
    %c24_55 = arith.constant 24 : index
    %c384_56 = arith.constant 384 : index
    %41 = vector.load %arg5[%c24_55, %c384_56] : memref<36x768xbf16, #tpu.memory_space<vmem>>, vector<4x384xbf16>
    tpu.vector_store %arg5[%c24_55, %c384_56], %40 {strides = array<i32>} : memref<36x768xbf16, #tpu.memory_space<vmem>>, vector<4x384xbf16>,
    %c0_57 = arith.constant 0 : index
    %c0_58 = arith.constant 0 : index
    %c49 = arith.constant 49 : index
    %42 = vector.load %arg1[%c0_57, %c0_58, %c49] : memref<2x4x512xbf16, #tpu.memory_space<vmem>>, vector<1x4x384xbf16>
    %43 = vector.shape_cast %42 : vector<1x4x384xbf16> to vector<4x384xbf16>
    %c28 = arith.constant 28 : index
    %c0_59 = arith.constant 0 : index
    %44 = vector.load %arg5[%c28, %c0_59] : memref<36x768xbf16, #tpu.memory_space<vmem>>, vector<4x384xbf16>
    tpu.vector_store %arg5[%c28, %c0_59], %43 {strides = array<i32>} : memref<36x768xbf16, #tpu.memory_space<vmem>>, vector<4x384xbf16>,
    %c1_60 = arith.constant 1 : index
    %c0_61 = arith.constant 0 : index
    %c49_62 = arith.constant 49 : index
    %45 = vector.load %arg1[%c1_60, %c0_61, %c49_62] : memref<2x4x512xbf16, #tpu.memory_space<vmem>>, vector<1x4x384xbf16>
    %46 = vector.shape_cast %45 : vector<1x4x384xbf16> to vector<4x384xbf16>
    %c28_63 = arith.constant 28 : index
    %c384_64 = arith.constant 384 : index
    %47 = vector.load %arg5[%c28_63, %c384_64] : memref<36x768xbf16, #tpu.memory_space<vmem>>, vector<4x384xbf16>
    tpu.vector_store %arg5[%c28_63, %c384_64], %46 {strides = array<i32>} : memref<36x768xbf16, #tpu.memory_space<vmem>>, vector<4x384xbf16>,
    %c0_65 = arith.constant 0 : index
    %c0_66 = arith.constant 0 : index
    %c50 = arith.constant 50 : index
    %48 = vector.load %arg1[%c0_65, %c0_66, %c50] : memref<2x4x512xbf16, #tpu.memory_space<vmem>>, vector<1x4x384xbf16>
    %49 = vector.shape_cast %48 : vector<1x4x384xbf16> to vector<4x384xbf16>
    %c32 = arith.constant 32 : index
    %c0_67 = arith.constant 0 : index
    %50 = vector.load %arg5[%c32, %c0_67] : memref<36x768xbf16, #tpu.memory_space<vmem>>, vector<4x384xbf16>
    tpu.vector_store %arg5[%c32, %c0_67], %49 {strides = array<i32>} : memref<36x768xbf16, #tpu.memory_space<vmem>>, vector<4x384xbf16>,
    %c1_68 = arith.constant 1 : index
    %c0_69 = arith.constant 0 : index
    %c50_70 = arith.constant 50 : index
    %51 = vector.load %arg1[%c1_68, %c0_69, %c50_70] : memref<2x4x512xbf16, #tpu.memory_space<vmem>>, vector<1x4x384xbf16>
    %52 = vector.shape_cast %51 : vector<1x4x384xbf16> to vector<4x384xbf16>
    %c32_71 = arith.constant 32 : index
    %c384_72 = arith.constant 384 : index
    %53 = vector.load %arg5[%c32_71, %c384_72] : memref<36x768xbf16, #tpu.memory_space<vmem>>, vector<4x384xbf16>
    tpu.vector_store %arg5[%c32_71, %c384_72], %52 {strides = array<i32>} : memref<36x768xbf16, #tpu.memory_space<vmem>>, vector<4x384xbf16>,
    %c0_73 = arith.constant 0 : index
    %c0_74 = arith.constant 0 : index
    %54 = vector.load %arg2[%c0_73, %c0_74] : memref<8x36xbf16, #tpu.memory_space<vmem>>, vector<8x36xbf16>
    %c0_75 = arith.constant 0 : index
    %c0_76 = arith.constant 0 : index
    %55 = vector.load %arg5[%c0_75, %c0_76] : memref<36x768xbf16, #tpu.memory_space<vmem>>, vector<36x768xbf16>
    %cst = arith.constant dense<0.000000e+00> : vector<8x768xf32>
    %56 = tpu.matmul %54, %55, %cst {dimension_numbers = #tpu.dot_dimension_numbers<[1], [0], [0], [1], [0, 0, 1, 1], [], []>} : vector<8x36xbf16>, vector<36x768xbf16>, vector<8x768xf32> -> vector<8x768xf32>
    %c0_77 = arith.constant 0 : index
    %c0_78 = arith.constant 0 : index
    %57 = vector.load %arg3[%c0_77, %c0_78] : memref<1x384xf32, #tpu.memory_space<vmem>>, vector<1x384xf32>
    %58 = vector.extract_strided_slice %56 {offsets = [0, 0], sizes = [8, 384], strides = [1, 1]} : vector<8x768xf32> to vector<8x384xf32>
    %59 = vector.broadcast %57 : vector<1x384xf32> to vector<8x384xf32>
    %60 = arith.mulf %58, %59 : vector<8x384xf32>
    %cst_79 = arith.constant dense<0.000000e+00> : vector<8xf32>
    %61 = vector.multi_reduction <add>, %60, %cst_79 [1] : vector<8x384xf32> to vector<8xf32>
    %62 = vector.shape_cast %61 : vector<8xf32> to vector<8x1xf32>
    %cst_80 = arith.constant 3.906250e-03 : f32
    %63 = vector.broadcast %cst_80 : f32 to vector<8x1xf32>
    %64 = arith.mulf %62, %63 : vector<8x1xf32>
    %65 = vector.broadcast %64 : vector<8x1xf32> to vector<8x384xf32>
    %66 = arith.subf %58, %65 : vector<8x384xf32>
    %67 = arith.mulf %66, %66 : vector<8x384xf32>
    %68 = vector.broadcast %57 : vector<1x384xf32> to vector<8x384xf32>
    %69 = arith.mulf %67, %68 : vector<8x384xf32>
    %cst_81 = arith.constant dense<0.000000e+00> : vector<8xf32>
    %70 = vector.multi_reduction <add>, %69, %cst_81 [1] : vector<8x384xf32> to vector<8xf32>
    %71 = vector.shape_cast %70 : vector<8xf32> to vector<8x1xf32>
    %cst_82 = arith.constant 3.906250e-03 : f32
    %72 = vector.broadcast %cst_82 : f32 to vector<8x1xf32>
    %73 = arith.mulf %71, %72 : vector<8x1xf32>
    %cst_83 = arith.constant 9.99999974E-6 : f32
    %74 = vector.broadcast %cst_83 : f32 to vector<8x1xf32>
    %75 = arith.addf %73, %74 : vector<8x1xf32>
    %76 = math.rsqrt %75 : vector<8x1xf32>
    %77 = vector.broadcast %76 : vector<8x1xf32> to vector<8x384xf32>
    %78 = arith.mulf %66, %77 : vector<8x384xf32>
    %cst_84 = arith.constant 0.000000e+00 : f32
    %79 = vector.broadcast %cst_84 : f32 to vector<8x384xf32>
    %80 = arith.maximumf %78, %79 : vector<8x384xf32>
    %c0_85 = arith.constant 0 : index
    %c0_86 = arith.constant 0 : index
    %c0_87 = arith.constant 0 : index
    %81 = vector.load %arg4[%c0_85, %c0_86, %c0_87] : memref<2x8x384xf32, #tpu.memory_space<vmem>>, vector<1x8x384xf32>
    %82 = vector.shape_cast %81 : vector<1x8x384xf32> to vector<8x384xf32>
    %83 = vector.shape_cast %80 : vector<8x384xf32> to vector<1x8x384xf32>
    tpu.vector_store %arg4[%c0_85, %c0_86, %c0_87], %83 {strides = array<i32>} : memref<2x8x384xf32, #tpu.memory_space<vmem>>, vector<1x8x384xf32>,
    %84 = vector.extract_strided_slice %56 {offsets = [0, 384], sizes = [8, 384], strides = [1, 1]} : vector<8x768xf32> to vector<8x384xf32>
    %85 = vector.broadcast %57 : vector<1x384xf32> to vector<8x384xf32>
    %86 = arith.mulf %84, %85 : vector<8x384xf32>
    %cst_88 = arith.constant dense<0.000000e+00> : vector<8xf32>
    %87 = vector.multi_reduction <add>, %86, %cst_88 [1] : vector<8x384xf32> to vector<8xf32>
    %88 = vector.shape_cast %87 : vector<8xf32> to vector<8x1xf32>
    %cst_89 = arith.constant 3.906250e-03 : f32
    %89 = vector.broadcast %cst_89 : f32 to vector<8x1xf32>
    %90 = arith.mulf %88, %89 : vector<8x1xf32>
    %91 = vector.broadcast %90 : vector<8x1xf32> to vector<8x384xf32>
    %92 = arith.subf %84, %91 : vector<8x384xf32>
    %93 = arith.mulf %92, %92 : vector<8x384xf32>
    %94 = vector.broadcast %57 : vector<1x384xf32> to vector<8x384xf32>
    %95 = arith.mulf %93, %94 : vector<8x384xf32>
    %cst_90 = arith.constant dense<0.000000e+00> : vector<8xf32>
    %96 = vector.multi_reduction <add>, %95, %cst_90 [1] : vector<8x384xf32> to vector<8xf32>
    %97 = vector.shape_cast %96 : vector<8xf32> to vector<8x1xf32>
    %cst_91 = arith.constant 3.906250e-03 : f32
    %98 = vector.broadcast %cst_91 : f32 to vector<8x1xf32>
    %99 = arith.mulf %97, %98 : vector<8x1xf32>
    %cst_92 = arith.constant 9.99999974E-6 : f32
    %100 = vector.broadcast %cst_92 : f32 to vector<8x1xf32>
    %101 = arith.addf %99, %100 : vector<8x1xf32>
    %102 = math.rsqrt %101 : vector<8x1xf32>
    %103 = vector.broadcast %102 : vector<8x1xf32> to vector<8x384xf32>
    %104 = arith.mulf %92, %103 : vector<8x384xf32>
    %cst_93 = arith.constant 0.000000e+00 : f32
    %105 = vector.broadcast %cst_93 : f32 to vector<8x384xf32>
    %106 = arith.maximumf %104, %105 : vector<8x384xf32>
    %c1_94 = arith.constant 1 : index
    %c0_95 = arith.constant 0 : index
    %c0_96 = arith.constant 0 : index
    %107 = vector.load %arg4[%c1_94, %c0_95, %c0_96] : memref<2x8x384xf32, #tpu.memory_space<vmem>>, vector<1x8x384xf32>
    %108 = vector.shape_cast %107 : vector<1x8x384xf32> to vector<8x384xf32>
    %109 = vector.shape_cast %106 : vector<8x384xf32> to vector<1x8x384xf32>
    tpu.vector_store %arg4[%c1_94, %c0_95, %c0_96], %109 {strides = array<i32>} : memref<2x8x384xf32, #tpu.memory_space<vmem>>, vector<1x8x384xf32>,
    return
  }
  func.func @transform_0(%arg0: i32) -> (i32, i32, i32) {
    %c0_i32 = arith.constant 0 : i32
    %c0_i32_0 = arith.constant 0 : i32
    %c0_i32_1 = arith.constant 0 : i32
    %c0_i32_2 = arith.constant 0 : i32
    return %c0_i32, %c0_i32_0, %c0_i32_1 : i32, i32, i32
  }
  func.func @transform_1(%arg0: i32) -> (i32, i32) {
    %c0_i32 = arith.constant 0 : i32
    %c0_i32_0 = arith.constant 0 : i32
    %c0_i32_1 = arith.constant 0 : i32
    return %c0_i32, %c0_i32_0 : i32, i32
  }
  func.func @transform_2(%arg0: i32) -> (i32, i32) {
    %c0_i32 = arith.constant 0 : i32
    %c0_i32_0 = arith.constant 0 : i32
    %c0_i32_1 = arith.constant 0 : i32
    return %c0_i32, %c0_i32_0 : i32, i32
  }
  func.func @transform_3(%arg0: i32) -> (i32, i32, i32) {
    %c0_i32 = arith.constant 0 : i32
    %c0_i32_0 = arith.constant 0 : i32
    %c0_i32_1 = arith.constant 0 : i32
    %c0_i32_2 = arith.constant 0 : i32
    return %c0_i32, %c0_i32_0, %c0_i32_1 : i32, i32, i32
  }
}

</mosaic_0001>

<bundles_post_ra>
// kernel: conv_block_forward.1
= control target key start
LH: loop header
LB: loop body
LE: loop exit
PB: predicated region body
PF: predicated region fallthrough
CT: control target
= control target key end

     0   :  { %s750_s20 = smov 127   ;;  %s752_s21 = smov 104   ;;  %vm50_vm0 = vcmask 1039360   ;;  %vm48_vm1 = vcmask 1043456   ;;  %vm134_vm2 = vcmask 850944   ;;  %vm92_vm3 = vcmask 1031168   ;;  %s932_s0 = inlined_call_operand.vmem [shape: bf16[2,4,512], index: 0, kind: input, shape index: {}]   ;;  %s933_s1 = inlined_call_operand.vmem [shape: bf16[8,36], index: 1, kind: input, shape index: {}]   ;;  %s934_s2 = inlined_call_operand.vmem [shape: f32[1,384], index: 2, kind: input, shape index: {}]   ;;  %s935_s3 = inlined_call_operand.vmem [shape: f32[2,8,384], index: 3, kind: output, shape index: {}]  }
   0x1   :  { %v15_v0 = vld [vmem:[%s932_s0] sm:$0x3f]  ;;  %v660_v1 = vld [vmem:[%s932_s0 + $0x8] sm:$0x3f]  ;;  %s753_s22 = smov 103   ;;  %s754_s23 = smov 102  }
   0x2   :  { %17 = vst [vmem:[#allocation1] ss:$2 sm:$0xff] %v15_v0  ;;  %v787_v4 = vld [vmem:[%s932_s0] sm:$0xff]  ;;  %v793_v7 = vld [vmem:[%s932_s0 + $0x8] sm:$0xff]  ;;  %s751_s0 = smov 126   ;;  %s755_s24 = smov 80  }
   0x3   :  { %s756_s25 = smov 79   ;;  %s757_s26 = smov 78   ;;  %vm218_vm4 = vcmask 834560   ;;  %vm176_vm5 = vcmask 842752   ;;  %vm260_vm6 = vcmask 654336   ;;  %vm302_vm7 = vcmask 646144  }
   0x4   :  { %vm344_vm8 = vcmask 637952   ;;  %vm466_vm9 = vcmask 1041408   ;;  %vm462_vm10 = vcmask 293888  }
   0x9   :  { %v18_v2 = vld.sshfl [vmem:[#allocation1] sm:$0xff pattern:$0x75643120]  ;;  %v19_v3 = vld.sshfl [vmem:[#allocation1 + $0x8] sm:$0xff pattern:$0x75643120] }
   0xa   :  { %27 = vst [vmem:[#allocation1] ss:$2 sm:$0xff] %v660_v1 }
   0xb   :  { %22 = vst [vmem:[#allocation2] sm:$0x33] %v18_v2 }
   0xc   :  { %23 = vst [vmem:[#allocation2 + $0x8] sm:$0x3] %v19_v3 }
  0x11   :  { %v28_v5 = vld.sshfl [vmem:[#allocation1] sm:$0xff pattern:$0x75643120]  ;;  %v29_v6 = vld.sshfl [vmem:[#allocation1 + $0x8] sm:$0xff pattern:$0x75643120] }
  0x12   :  { %37 = vst [vmem:[#allocation1 + $0x1] ss:$2 sm:$0xff] %v787_v4 }
  0x13   :  { %32 = vst [vmem:[#allocation2 + $0xc] sm:$0x33] %v28_v5 }
  0x14   :  { %33 = vst [vmem:[#allocation2 + $0x14] sm:$0x3] %v29_v6 }
  0x19   :  { %v40_v8 = vld.sshfl [vmem:[#allocation1 + $0x8] sm:$0xff pattern:$0x75643120]  ;;  %v38_v9 = vld.sshfl [vmem:[#allocation1] sm:$0xff pattern:$0x75643120] }
  0x1a   :  { %44 = vrot.lane.b32.xlu1 %v40_v8, %s750_s20  ;;  %42 = vrot.lane.b32.xlu0 %v38_v9, %s750_s20  ;;  %60 = vst [vmem:[#allocation1 + $0x1] ss:$2 sm:$0xff] %v793_v7 }
  0x21   :  { %v798_v10 = vld.sshfl [vmem:[#allocation1] sm:$0xff pattern:$0x75643120]  ;;  %v800_v11 = vld.sshfl [vmem:[#allocation1 + $0x8] sm:$0xff pattern:$0x75643120] }
  0x22   :  { %80 = vst [vmem:[#allocation1] ss:$2 sm:$0xff] %v787_v4 }
  0x29   :  { %v81_v12 = vld.sshfl [vmem:[#allocation1] sm:$0xff pattern:$0x75643120]  ;;  %v83_v13 = vld.sshfl [vmem:[#allocation1 + $0x8] sm:$0xff pattern:$0x75643120] }
  0x2a   :  { %101 = vst [vmem:[#allocation1] ss:$2 sm:$0xff] %v793_v7  ;;  %87 = vrot.lane.b32.xlu0 %v83_v13, %s751_s0  ;;  %85 = vrot.lane.b32.xlu2 %v81_v12, %s751_s0 }
  0x31   :  { %v806_v14 = vld.sshfl [vmem:[#allocation1] sm:$0xff pattern:$0x75643120]  ;;  %v808_v15 = vld.sshfl [vmem:[#allocation1 + $0x8] sm:$0xff pattern:$0x75643120] }
  0x32   :  { %122 = vst [vmem:[#allocation1 + $0x1] ss:$2 sm:$0xff] %v787_v4 }
  0x39   :  { %v123_v16 = vld.sshfl [vmem:[#allocation1] sm:$0xff pattern:$0x75643120]  ;;  %v125_v17 = vld.sshfl [vmem:[#allocation1 + $0x8] sm:$0xff pattern:$0x75643120] }
  0x3a   :  { %127 = vrot.lane.b32.xlu1 %v123_v16, %s752_s21  ;;  %144 = vst [vmem:[#allocation1 + $0x1] ss:$2 sm:$0xff] %v793_v7  ;;  %129 = vrot.lane.b32.xlu2 %v125_v17, %s752_s21 }
  0x41   :  { %v814_v18 = vld.sshfl [vmem:[#allocation1] sm:$0xff pattern:$0x75643120]  ;;  %v816_v19 = vld.sshfl [vmem:[#allocation1 + $0x8] sm:$0xff pattern:$0x75643120] }
  0x42   :  { %164 = vst [vmem:[#allocation1] ss:$2 sm:$0xff] %v787_v4 }
  0x49   :  { %v165_v20 = vld.sshfl [vmem:[#allocation1] sm:$0xff pattern:$0x75643120]  ;;  %v167_v21 = vld.sshfl [vmem:[#allocation1 + $0x8] sm:$0xff pattern:$0x75643120] }
  0x4a   :  { %169 = vrot.lane.b32.xlu1 %v165_v20, %s753_s22  ;;  %185 = vst [vmem:[#allocation1] ss:$2 sm:$0xff] %v793_v7 }
  0x51   :  { %v186_v22 = vld.sshfl [vmem:[#allocation1] sm:$0xff pattern:$0x75643120]  ;;  %v188_v23 = vld.sshfl [vmem:[#allocation1 + $0x8] sm:$0xff pattern:$0x75643120] }
  0x52   :  { %171 = vrot.lane.b32.xlu1 %v167_v21, %s753_s22  ;;  %190 = vrot.lane.b32.xlu0 %v186_v22, %s753_s22  ;;  %206 = vst [vmem:[#allocation1 + $0x1] ss:$2 sm:$0xff] %v787_v4 }
  0x59   :  { %v207_v24 = vld.sshfl [vmem:[#allocation1] sm:$0xff pattern:$0x75643120]  ;;  %v209_v25 = vld.sshfl [vmem:[#allocation1 + $0x8] sm:$0xff pattern:$0x75643120] }
  0x5a   :  { %192 = vrot.lane.b32.xlu1 %v188_v23, %s753_s22  ;;  %228 = vst [vmem:[#allocation1 + $0x1] ss:$2 sm:$0xff] %v793_v7  ;;  %211 = vrot.lane.b32.xlu2 %v207_v24, %s754_s23 }
  0x61   :  { %v231_v26 = vld.sshfl [vmem:[#allocation1 + $0x8] sm:$0xff pattern:$0x75643120]  ;;  %v229_v27 = vld.sshfl [vmem:[#allocation1] sm:$0xff pattern:$0x75643120] }
  0x62   :  { %235 = vrot.lane.b32.xlu0 %v231_v26, %s754_s23  ;;  %248 = vst [vmem:[#allocation1] ss:$2 sm:$0xff] %v787_v4  ;;  %213 = vrot.lane.b32.xlu2 %v209_v25, %s754_s23 }
  0x69   :  { %v251_v28 = vld.sshfl [vmem:[#allocation1 + $0x8] sm:$0xff pattern:$0x75643120]  ;;  %v249_v29 = vld.sshfl [vmem:[#allocation1] sm:$0xff pattern:$0x75643120] }
  0x6a   :  { %255 = vrot.lane.b32.xlu1 %v251_v28, %s755_s24  ;;  %253 = vrot.lane.b32.xlu0 %v249_v29, %s755_s24  ;;  %269 = vst [vmem:[#allocation1] ss:$2 sm:$0xff] %v793_v7 }
  0x6b   :  { %233 = vrot.lane.b32.xlu2 %v229_v27, %s754_s23 }
  0x71   :  { %v270_v30 = vld.sshfl [vmem:[#allocation1] sm:$0xff pattern:$0x75643120]  ;;  %v272_v31 = vld.sshfl [vmem:[#allocation1 + $0x8] sm:$0xff pattern:$0x75643120] }
  0x72   :  { %274 = vrot.lane.b32.xlu1 %v270_v30, %s755_s24  ;;  %290 = vst [vmem:[#allocation1 + $0x1] ss:$2 sm:$0xff] %v787_v4 }
  0x73   :  { %276 = vrot.lane.b32.xlu2 %v272_v31, %s755_s24 }
  0x79   :  { %v293_v32 = vld.sshfl [vmem:[#allocation1 + $0x8] sm:$0xff pattern:$0x75643120]  ;;  %v291_v33 = vld.sshfl [vmem:[#allocation1] sm:$0xff pattern:$0x75643120] }
  0x7a   :  { %297 = vrot.lane.b32.xlu0 %v293_v32, %s756_s25  ;;  %312 = vst [vmem:[#allocation1 + $0x1] ss:$2 sm:$0xff] %v793_v7 }
  0x7b   :  { %295 = vrot.lane.b32.xlu2 %v291_v33, %s756_s25 }
  0x81   :  { %v315_v34 = vld.sshfl [vmem:[#allocation1 + $0x8] sm:$0xff pattern:$0x75643120]  ;;  %v313_v35 = vld.sshfl [vmem:[#allocation1] sm:$0xff pattern:$0x75643120] }
  0x82   :  { %319 = vrot.lane.b32.xlu1 %v315_v34, %s756_s25  ;;  %332 = vst [vmem:[#allocation1] ss:$2 sm:$0xff] %v787_v4 }
  0x84   :  { %v86_v38 = vpop.permute.xlu2 %85 }
  0x85   :  { %v89_v51 = vrot.slane %v86_v38, 4 }
  0x89   :  { %v333_v36 = vld.sshfl [vmem:[#allocation1] sm:$0xff pattern:$0x75643120]  ;;  %v335_v37 = vld.sshfl [vmem:[#allocation1 + $0x8] sm:$0xff pattern:$0x75643120] }
  0x8a   :  { %337 = vrot.lane.b32.xlu0 %v333_v36, %s757_s26  ;;  %353 = vst [vmem:[#allocation1] ss:$2 sm:$0xff] %v793_v7 }
  0x8c   :  { %v45_v39 = vpop.permute.xlu1 %44  ;;  %v43_v40 = vpop.permute.xlu0 %42 }
  0x8d   :  { %v47_v41 = vrot.slane %v45_v39, 4  ;;  %v46_v42 = vrot.slane %v43_v40, 4 }
  0x8f   :  { %v52_v43 = vsel %vm50_vm0, %v45_v39, %v47_v41  ;;  %v49_v44 = vsel %vm48_vm1, %v46_v42, %v47_v41 }
  0x90   :  { %56 = vst [vmem:[#allocation2 + $0x8] sm:$0xc] %v52_v43  ;;  %v51_v45 = vsel %vm50_vm0, %v43_v40, %v49_v44 }
  0x91   :  { %v354_v46 = vld.sshfl [vmem:[#allocation1] sm:$0xff pattern:$0x75643120]  ;;  %v356_v47 = vld.sshfl [vmem:[#allocation1 + $0x8] sm:$0xff pattern:$0x75643120] }
  0x92   :  { %339 = vrot.lane.b32.xlu0 %v335_v37, %s757_s26  ;;  %358 = vrot.lane.b32.xlu1 %v354_v46, %s757_s26  ;;  %55 = vst [vmem:[#allocation2] sm:$0xcc] %v51_v45 }
  0x93   :  { %360 = vrot.lane.b32.xlu2 %v356_v47, %s757_s26 }
  0x94   :  { %v130_v48 = vpop.permute.xlu2 %129 }
  0x95   :  { %v132_v49 = vrot.slane %v130_v48, 4 }
  0x97   :  { %v136_v50 = vsel %vm134_vm2, %v130_v48, %v132_v49 }
  0x98   :  { %140 = vst [vmem:[#allocation2 + $0x20] sm:$0xc] %v136_v50 }
  0x9a   :  { %317 = vrot.lane.b32.xlu0 %v313_v35, %s756_s25  ;;  %106 = vrot.lane.b32.xlu1 %v806_v14, %s751_s0 }
  0x9b   :  { %65 = vrot.lane.b32.xlu2 %v798_v10, %s750_s20 }
  0x9c   :  { %v88_v52 = vpop.permute.xlu0 %87 }
  0x9d   :  { %v90_v53 = vrot.slane %v88_v52, 4 }
  0x9f   :  { %v91_v54 = vsel %vm48_vm1, %v89_v51, %v90_v53  ;;  %v94_v55 = vsel %vm92_vm3, %v88_v52, %v90_v53 }
  0xa0   :  { %v93_v56 = vsel %vm92_vm3, %v86_v38, %v91_v54  ;;  %98 = vst [vmem:[#allocation2 + $0x20] sm:$0x3] %v94_v55 }
  0xa1   :  { %97 = vst [vmem:[#allocation2 + $0x18] sm:$0x33] %v93_v56 }
  0xa2   :  { %67 = vrot.lane.b32.xlu0 %v800_v11, %s750_s20  ;;  %151 = vrot.lane.b32.xlu1 %v816_v19, %s752_s21 }
  0xa3   :  { %108 = vrot.lane.b32.xlu2 %v808_v15, %s751_s0 }
  0xaa   :  { %149 = vrot.lane.b32.xlu0 %v814_v18, %s752_s21 }
  0xac   :  { %v128_v57 = vpop.permute.xlu1 %127 }
  0xad   :  { %v131_v58 = vrot.slane %v128_v57, 4 }
  0xaf   :  { %v133_v59 = vsel %vm48_vm1, %v131_v58, %v132_v49 }
  0xb0   :  { %v135_v60 = vsel %vm134_vm2, %v128_v57, %v133_v59 }
  0xb1   :  { %139 = vst [vmem:[#allocation2 + $0x18] sm:$0xcc] %v135_v60 }
  0xb4   :  { %v212_v61 = vpop.permute.xlu2 %211 }
  0xb5   :  { %v215_v62 = vrot.slane %v212_v61, 4 }
  0xbc   :  { %v170_v63 = vpop.permute.xlu1 %169  ;;  %v214_v0 = vpop.permute.xlu2 %213 }
  0xbd   :  { %v216_v1 = vrot.slane %v214_v0, 4  ;;  %v173_v5 = vrot.slane %v170_v63, 4 }
  0xbf   :  { %v217_v2 = vsel %vm48_vm1, %v215_v62, %v216_v1  ;;  %v220_v3 = vsel %vm218_vm4, %v214_v0, %v216_v1 }
  0xc0   :  { %v219_v4 = vsel %vm218_vm4, %v212_v61, %v217_v2  ;;  %224 = vst [vmem:[#allocation2 + $0x38] sm:$0xc] %v220_v3 }
  0xc1   :  { %223 = vst [vmem:[#allocation2 + $0x30] sm:$0xcc] %v219_v4 }
  0xc4   :  { %v172_v6 = vpop.permute.xlu1 %171  ;;  %v191_v12 = vpop.permute.xlu0 %190 }
  0xc5   :  { %v174_v7 = vrot.slane %v172_v6, 4  ;;  %v234_v8 = vpop.permute.xlu2 %233  ;;  %v194_v13 = vrot.slane %v191_v12, 4 }
  0xc6   :  { %v237_v22 = vrot.slane %v234_v8, 4 }
  0xc7   :  { %v175_v9 = vsel %vm48_vm1, %v173_v5, %v174_v7  ;;  %v178_v10 = vsel %vm176_vm5, %v172_v6, %v174_v7 }
  0xc8   :  { %v177_v11 = vsel %vm176_vm5, %v170_v63, %v175_v9  ;;  %182 = vst [vmem:[#allocation2 + $0x38] sm:$0x3] %v178_v10 }
  0xc9   :  { %181 = vst [vmem:[#allocation2 + $0x30] sm:$0x33] %v177_v11 }
  0xcc   :  { %v193_v14 = vpop.permute.xlu1 %192 }
  0xcd   :  { %v195_v15 = vrot.slane %v193_v14, 4  ;;  %v277_v16 = vpop.permute.xlu2 %276 }
  0xce   :  { %v279_v17 = vrot.slane %v277_v16, 4 }
  0xcf   :  { %v196_v18 = vsel %vm48_vm1, %v194_v13, %v195_v15  ;;  %v198_v19 = vsel %vm176_vm5, %v193_v14, %v195_v15 }
  0xd0   :  { %v197_v20 = vsel %vm176_vm5, %v191_v12, %v196_v18  ;;  %202 = vst [vmem:[#allocation2 + $0x44] sm:$0x3] %v198_v19  ;;  %v282_v21 = vsel %vm260_vm6, %v277_v16, %v279_v17 }
  0xd1   :  { %201 = vst [vmem:[#allocation2 + $0x3c] sm:$0x33] %v197_v20 }
  0xd2   :  { %286 = vst [vmem:[#allocation2 + $0x5c] sm:$0x3] %v282_v21 }
  0xd4   :  { %v236_v23 = vpop.permute.xlu0 %235 }
  0xd5   :  { %v238_v24 = vrot.slane %v236_v23, 4  ;;  %v296_v37 = vpop.permute.xlu2 %295 }
  0xd6   :  { %v299_v40 = vrot.slane %v296_v37, 4 }
  0xd7   :  { %v241_v25 = vsel %vm218_vm4, %v236_v23, %v238_v24  ;;  %v239_v26 = vsel %vm48_vm1, %v237_v22, %v238_v24 }
  0xd8   :  { %245 = vst [vmem:[#allocation2 + $0x44] sm:$0xc] %v241_v25  ;;  %v240_v27 = vsel %vm218_vm4, %v234_v8, %v239_v26 }
  0xd9   :  { %244 = vst [vmem:[#allocation2 + $0x3c] sm:$0xcc] %v240_v27 }
  0xdc   :  { %v256_v28 = vpop.permute.xlu1 %255  ;;  %v254_v29 = vpop.permute.xlu0 %253 }
  0xdd   :  { %v258_v30 = vrot.slane %v256_v28, 4  ;;  %v257_v31 = vrot.slane %v254_v29, 4 }
  0xdf   :  { %v262_v32 = vsel %vm260_vm6, %v256_v28, %v258_v30  ;;  %v259_v33 = vsel %vm48_vm1, %v257_v31, %v258_v30 }
  0xe0   :  { %266 = vst [vmem:[#allocation2 + $0x50] sm:$0x3] %v262_v32  ;;  %v261_v34 = vsel %vm260_vm6, %v254_v29, %v259_v33 }
  0xe1   :  { %265 = vst [vmem:[#allocation2 + $0x48] sm:$0x33] %v261_v34 }
  0xe4   :  { %v275_v35 = vpop.permute.xlu1 %274 }
  0xe5   :  { %v278_v36 = vrot.slane %v275_v35, 4 }
  0xe7   :  { %v280_v38 = vsel %vm48_vm1, %v278_v36, %v279_v17 }
  0xe8   :  { %v281_v39 = vsel %vm260_vm6, %v275_v35, %v280_v38  ;;  %v695_v38 = vld [vmem:[#allocation2 + $0x30] sm:$0xf] }
  0xe9   :  { %285 = vst [vmem:[#allocation2 + $0x54] sm:$0x33] %v281_v39  ;;  %v732_v39 = vld [vmem:[#allocation2 + $0x34] sm:$0xf] }
  0xec   :  { %v298_v41 = vpop.permute.xlu0 %297 }
  0xed   :  { %v300_v42 = vrot.slane %v298_v41, 4  ;;  %v361_v43 = vpop.permute.xlu2 %360 }
  0xee   :  { %v363_v44 = vrot.slane %v361_v43, 4 }
  0xef   :  { %v304_v45 = vsel %vm302_vm7, %v298_v41, %v300_v42  ;;  %v301_v46 = vsel %vm48_vm1, %v299_v40, %v300_v42  ;;  %v703_v40 = vld [vmem:[#allocation2 + $0x38] sm:$0xf]  ;;  %v671_v41 = vld [vmem:[#allocation2] sm:$0xf]  ;;  %v726_v42 = vld [vmem:[#allocation2 + $0x4] sm:$0xf] }
  0xf0   :  { %308 = vst [vmem:[#allocation2 + $0x50] sm:$0xc] %v304_v45  ;;  %v303_v47 = vsel %vm302_vm7, %v296_v37, %v301_v46  ;;  %v366_v48 = vsel %vm344_vm8, %v361_v43, %v363_v44 }
  0xf1   :  { %307 = vst [vmem:[#allocation2 + $0x48] sm:$0xcc] %v303_v47  ;;  %v733_v47 = vld [vmem:[#allocation2 + $0x3c] sm:$0xf] }
  0xf2   :  { %370 = vst [vmem:[#allocation2 + $0x74] sm:$0x3] %v366_v48 }
  0xf4   :  { %v320_v49 = vpop.permute.xlu1 %319 }
  0xf5   :  { %v322_v50 = vrot.slane %v320_v49, 4  ;;  %v875_v51 = vpop.permute.xlu2 %65 }
  0xf6   :  { %v69_v17 = vrot.slane %v875_v51, 4 }
  0xf7   :  { %v325_v52 = vsel %vm302_vm7, %v320_v49, %v322_v50  ;;  %v736_v33 = vld [vmem:[#allocation2 + $0x4c] sm:$0xf0] }
  0xf8   :  { %329 = vst [vmem:[#allocation2 + $0x5c] sm:$0xc] %v325_v52  ;;  %v735_v25 = vld [vmem:[#allocation2 + $0x44] sm:$0xf0]  ;;  %v697_v30 = vld [vmem:[#allocation2 + $0x48] sm:$0xf0]  ;;  %v704_v49 = vor.u32 %v736_v33, %v703_v40 }
  0xf9   :  { %v696_v45 = vor.u32 %v735_v25, %v695_v38  ;;  %v700_v46 = vor.u32 %v732_v39, %v697_v30  ;;  %v729_v52 = vld [vmem:[#allocation2 + $0x14] sm:$0xf0] }
  0xfc   :  { %v338_v53 = vpop.permute.xlu0 %337 }
  0xfd   :  { %v109_v54 = vpop.permute.xlu2 %108  ;;  %v341_v59 = vrot.slane %v338_v53, 4 }
  0xfe   :  { %v111_v55 = vrot.slane %v109_v54, 4 }
 0x100   :  { %v114_v56 = vsel %vm92_vm3, %v109_v54, %v111_v55  ;;  %v679_v54 = vld [vmem:[#allocation2 + $0x8] sm:$0xf] }
 0x101   :  { %118 = vst [vmem:[#allocation2 + $0x2c] sm:$0x3] %v114_v56 }
 0x104   :  { %v340_v57 = vpop.permute.xlu0 %339  ;;  %v359_v58 = vpop.permute.xlu1 %358 }
 0x105   :  { %v342_v60 = vrot.slane %v340_v57, 4  ;;  %v362_v61 = vrot.slane %v359_v58, 4 }
 0x107   :  { %v343_v62 = vsel %vm48_vm1, %v341_v59, %v342_v60  ;;  %v346_v63 = vsel %vm344_vm8, %v340_v57, %v342_v60  ;;  %v364_v0 = vsel %vm48_vm1, %v362_v61, %v363_v44 }
 0x108   :  { %v345_v1 = vsel %vm344_vm8, %v338_v53, %v343_v62  ;;  %350 = vst [vmem:[#allocation2 + $0x68] sm:$0x3] %v346_v63  ;;  %v365_v2 = vsel %vm344_vm8, %v359_v58, %v364_v0  ;;  %v673_v53 = vld [vmem:[#allocation2 + $0x18] sm:$0xf0]  ;;  %v672_v58 = vor.u32 %v729_v52, %v671_v41  ;;  %v371_v63 = vld [vmem:[%s933_s1] sm:$0xf] }
 0x109   :  { %349 = vst [vmem:[#allocation2 + $0x60] sm:$0x33] %v345_v1  ;;  %v676_v59 = vor.u32 %v726_v42, %v673_v53 }
 0x10a   :  { %369 = vst [vmem:[#allocation2 + $0x6c] sm:$0x33] %v365_v2 }
 0x10c   :  { %v318_v3 = vpop.permute.xlu0 %317  ;;  %v107_v4 = vpop.permute.xlu1 %106 }
 0x10d   :  { %v321_v5 = vrot.slane %v318_v3, 4  ;;  %v110_v6 = vrot.slane %v107_v4, 4 }
 0x10f   :  { %v323_v7 = vsel %vm48_vm1, %v321_v5, %v322_v50  ;;  %v112_v8 = vsel %vm48_vm1, %v110_v6, %v111_v55  ;;  %v730_v55 = vld [vmem:[#allocation2 + $0x1c] sm:$0xf0] }
 0x110   :  { %v324_v9 = vsel %vm302_vm7, %v318_v3, %v323_v7  ;;  %v113_v10 = vsel %vm92_vm3, %v107_v4, %v112_v8  ;;  %v384_v11 = vld [vmem:[#allocation2 + $0x60] sm:$0x33]  ;;  %v680_v61 = vor.u32 %v730_v55, %v679_v54  ;;  %v713_v3 = vld [vmem:[#allocation2 + $0x58] sm:$0xf0] }
 0x111   :  { %328 = vst [vmem:[#allocation2 + $0x54] sm:$0xcc] %v324_v9  ;;  %v426_v12 = vunpack.c.l.b16 %v384_v11  ;;  %v427_v13 = vunpack.c.h.b16 %v384_v11  ;;  %v385_v14 = vld [vmem:[#allocation2 + $0x68] sm:$0x33]  ;;  %v386_v20 = vld [vmem:[#allocation2 + $0x70] sm:$0x33] }
 0x112   :  { %117 = vst [vmem:[#allocation2 + $0x24] sm:$0x33] %v113_v10  ;;  %v428_v15 = vunpack.c.l.b16 %v385_v14  ;;  %v429_v16 = vunpack.c.h.b16 %v385_v14  ;;  %v430_v34 = vunpack.c.l.b16 %v386_v20  ;;  %v431_v43 = vunpack.c.h.b16 %v386_v20  ;;  %v711_v5 = vld [vmem:[#allocation2 + $0x40] sm:$0xf]  ;;  %v734_v7 = vld [vmem:[#allocation2 + $0x44] sm:$0xf] }
 0x113   :  { %v444_v18 = vpack.c.b16 %v426_v12, %v426_v12  ;;  %v445_v19 = vpack.c.b16 %v427_v13, %v427_v13  ;;  %v716_v8 = vor.u32 %v734_v7, %v713_v3 }
 0x114   :  { %v68_v21 = vpop.permute.xlu0 %67  ;;  %v152_v22 = vpop.permute.xlu1 %151  ;;  %v446_v23 = vpack.c.b16 %v428_v15, %v428_v15  ;;  %v447_v24 = vpack.c.b16 %v429_v16, %v429_v16  ;;  %v448_v56 = vpack.c.b16 %v430_v34, %v430_v34  ;;  %v449_v57 = vpack.c.b16 %v431_v43, %v431_v43 }
 0x115   :  { %v70_v26 = vrot.slane %v68_v21, 4  ;;  %v154_v27 = vrot.slane %v152_v22, 4  ;;  %v468_v28 = vsel %vm466_vm9, %v444_v18, 0  ;;  %v471_v29 = vsel %vm466_vm9, %v445_v19, 0  ;;  %v563_v18 = vld [vmem:[%s934_s2] sm:$0x7] }
 0x116   :  { %490 = vmatpush.bf16.msra.mxu0 %v468_v28  ;;  %503 = vmatpush.bf16.msra.mxu1 %v471_v29  ;;  %v474_v31 = vsel %vm466_vm9, %v446_v23, 0  ;;  %v477_v32 = vsel %vm466_vm9, %v447_v24, 0  ;;  %v480_v62 = vsel %vm466_vm9, %v448_v56, 0  ;;  %v483_v2 = vsel %vm466_vm9, %v449_v57, 0 }
 0x117   :  { %v71_v35 = vsel %vm48_vm1, %v69_v17, %v70_v26  ;;  %v73_v36 = vsel %vm50_vm0, %v68_v21, %v70_v26  ;;  %v157_v37 = vsel %vm134_vm2, %v152_v22, %v154_v27  ;;  %516 = vmatpush.bf16.msra.mxu2 %v474_v31  ;;  %529 = vmatpush.bf16.msra.mxu3 %v477_v32  ;;  %v565_v19 = vperm.slane %v563_v18, 0 }
 0x118   :  { %v72_v44 = vsel %vm50_vm0, %v875_v51, %v71_v35  ;;  %77 = vst [vmem:[#allocation2 + $0x14] sm:$0xc] %v73_v36  ;;  %v705_v48 = vld [vmem:[#allocation2 + $0x50] sm:$0xf0]  ;;  %v737_v0 = vld [vmem:[#allocation2 + $0x54] sm:$0xf0] }
 0x119   :  { %76 = vst [vmem:[#allocation2 + $0xc] sm:$0xcc] %v72_v44  ;;  %v708_v50 = vor.u32 %v733_v47, %v705_v48  ;;  %v712_v6 = vor.u32 %v737_v0, %v711_v5  ;;  %v566_v20 = vperm.slane %v563_v18, 1  ;;  %v567_v25 = vperm.slane %v563_v18, 2 }
 0x11a   :  { %161 = vst [vmem:[#allocation2 + $0x2c] sm:$0xc] %v157_v37  ;;  %491 = vmatpush.bf16.msra.mxu0 %v696_v45  ;;  %504 = vmatpush.bf16.msra.mxu1 %v700_v46 }
 0x11b   :  { %517 = vmatpush.bf16.msra.mxu2 %v704_v49  ;;  %530 = vmatpush.bf16.msra.mxu3 %v708_v50 }
 0x11c   :  { %v150_v51 = vpop.permute.xlu0 %149 }
 0x11d   :  { %v153_v60 = vrot.slane %v150_v51, 4 }
 0x11e   :  { %492 = vmatpush.bf16.msra.mxu0 %v672_v58  ;;  %505 = vmatpush.bf16.msra.mxu1 %v676_v59 }
 0x11f   :  { %v155_v1 = vsel %vm48_vm1, %v153_v60, %v154_v27  ;;  %518 = vmatpush.bf16.msra.mxu2 %v680_v61  ;;  %v728_v9 = vld [vmem:[#allocation2 + $0x14] sm:$0xf] }
 0x120   :  { %v156_v4 = vsel %vm134_vm2, %v150_v51, %v155_v1  ;;  %v727_v12 = vld [vmem:[#allocation2 + $0xc] sm:$0xf]  ;;  %v687_v14 = vld [vmem:[#allocation2 + $0x10] sm:$0xf] }
 0x121   :  { %160 = vst [vmem:[#allocation2 + $0x24] sm:$0xcc] %v156_v4  ;;  %717 = vmatmul.msk.bf16.vlgmr.msra.gmra.mxu0 %vm462_vm10, %v371_v63  ;;  %718 = vmatmul.msk.bf16.vlgmr.msra.gmra.mxu1 %vm462_vm10, %v371_v63  ;;  %v689_v10 = vld [vmem:[#allocation2 + $0x28] sm:$0xf0] }
 0x122   :  { %542 = vmatpush.bf16.msrb.mxu0 %v480_v62  ;;  %555 = vmatpush.bf16.msrb.mxu1 %v483_v2  ;;  %v692_v11 = vor.u32 %v728_v9, %v689_v10 }
 0x123   :  { %719 = vmatmul.msk.bf16.vlgmr.msra.gmra.mxu2 %vm462_vm10, %v371_v63 }
 0x126   :  { %543 = vmatpush.bf16.msrb.mxu0 %v712_v6  ;;  %556 = vmatpush.bf16.msrb.mxu1 %v716_v8 }
 0x128   :  { %v681_v13 = vld [vmem:[#allocation2 + $0x20] sm:$0xf0]  ;;  %v731_v15 = vld [vmem:[#allocation2 + $0x24] sm:$0xf0] }
 0x129   :  { %v684_v16 = vor.u32 %v727_v12, %v681_v13  ;;  %v688_v17 = vor.u32 %v731_v15, %v687_v14 }
 0x12a   :  { %557 = vmatpush.bf16.msrb.mxu1 %v692_v11 }
 0x12b   :  { %531 = vmatpush.bf16.msra.mxu3 %v684_v16  ;;  %544 = vmatpush.bf16.msrb.mxu0 %v688_v17 }
 0x12e   :  { %720 = vmatmul.msk.bf16.vlgmr.msra.gmra.mxu3 %vm462_vm10, %v371_v63 }
 0x131   :  { %721 = vmatmul.msk.bf16.vlgmr.msrb.gmra.mxu0 %vm462_vm10, %v371_v63  ;;  %722 = vmatmul.msk.bf16.vlgmr.msrb.gmra.mxu1 %vm462_vm10, %v371_v63 }
 0x19e   :  { %v494_v21 = vpop.f32.mrf.mxu0  ;;  %v507_v22 = vpop.f32.mrf.mxu1 }
 0x19f   :  { %v571_v23 = vmul.f32 %v565_v19, %v494_v21  ;;  %v572_v24 = vmul.f32 %v566_v20, %v507_v22 }
 0x1a1   :  { %v574_v26 = vadd.f32 %v572_v24, %v571_v23 }
 0x1a6   :  { %v520_v27 = vpop.f32.mrf.mxu2  ;;  %v496_v29 = vpop.f32.mrf.mxu0 }
 0x1a7   :  { %v573_v28 = vmul.f32 %v567_v25, %v520_v27  ;;  %v509_v30 = vpop.f32.mrf.mxu1 }
 0x1a9   :  { %v575_v31 = vadd.f32 %v574_v26, %v573_v28 }
 0x1ab   :  { %576 = vadd.xlane.f32.xlu2 %v575_v31 }
 0x1ae   :  { %v522_v32 = vpop.f32.mrf.mxu2  ;;  %v546_v33 = vpop.f32.mrf.mxu0 }
 0x1af   :  { %v559_v34 = vpop.f32.mrf.mxu1  ;;  %v614_v35 = vmul.f32 %v566_v20, %v546_v33 }
 0x1b0   :  { %v615_v37 = vmul.f32 %v567_v25, %v559_v34 }
 0x1b1   :  { %v533_v36 = vpop.f32.mrf.mxu3 }
 0x1b2   :  { %v613_v38 = vmul.f32 %v565_v19, %v533_v36 }
 0x1b4   :  { %v616_v39 = vadd.f32 %v614_v35, %v613_v38 }
 0x1b6   :  { %v548_v40 = vpop.f32.mrf.mxu0  ;;  %v617_v42 = vadd.f32 %v616_v39, %v615_v37 }
 0x1b7   :  { %v561_v41 = vpop.f32.mrf.mxu1 }
 0x1b8   :  { %618 = vadd.xlane.f32.xlu0 %v617_v42 }
 0x1b9   :  { %v535_v43 = vpop.f32.mrf.mxu3 }
 0x21e   :  { %v577_v44 = vpop.xlane.xlu2 %576 }
 0x21f   :  { %v578_v45 = vmul.f32 0.00390625, %v577_v44 }
 0x221   :  { %v579_v46 = vsub.f32 %v494_v21, %v578_v45  ;;  %v580_v47 = vsub.f32 %v507_v22, %v578_v45  ;;  %v581_v48 = vsub.f32 %v520_v27, %v578_v45 }
 0x223   :  { %v582_v49 = vmul.f32 %v579_v46, %v579_v46  ;;  %v583_v50 = vmul.f32 %v580_v47, %v580_v47  ;;  %v584_v52 = vmul.f32 %v581_v48, %v581_v48 }
 0x225   :  { %v585_v53 = vmul.f32 %v582_v49, %v565_v19  ;;  %v586_v54 = vmul.f32 %v583_v50, %v566_v20  ;;  %v587_v55 = vmul.f32 %v584_v52, %v567_v25 }
 0x227   :  { %v588_v56 = vadd.f32 %v586_v54, %v585_v53 }
 0x229   :  { %v589_v57 = vadd.f32 %v588_v56, %v587_v55 }
 0x22b   :  { %590 = vadd.xlane.f32.xlu1 %v589_v57  ;;  %v619_v51 = vpop.xlane.xlu0 %618 }
 0x22c   :  { %v620_v58 = vmul.f32 0.00390625, %v619_v51 }
 0x22e   :  { %v621_v59 = vsub.f32 %v533_v36, %v620_v58  ;;  %v622_v60 = vsub.f32 %v546_v33, %v620_v58  ;;  %v623_v61 = vsub.f32 %v559_v34, %v620_v58 }
 0x230   :  { %v624_v62 = vmul.f32 %v621_v59, %v621_v59  ;;  %v625_v63 = vmul.f32 %v622_v60, %v622_v60  ;;  %v626_v0 = vmul.f32 %v623_v61, %v623_v61 }
 0x232   :  { %v627_v1 = vmul.f32 %v624_v62, %v565_v19  ;;  %v628_v2 = vmul.f32 %v625_v63, %v566_v20  ;;  %v629_v3 = vmul.f32 %v626_v0, %v567_v25 }
 0x234   :  { %v630_v4 = vadd.f32 %v628_v2, %v627_v1 }
 0x236   :  { %v631_v5 = vadd.f32 %v630_v4, %v629_v3 }
 0x238   :  { %632 = vadd.xlane.f32.xlu2 %v631_v5 }
 0x29e   :  { %v591_v6 = vpop.xlane.xlu1 %590 }
 0x29f   :  { %v592_v7 = vmul.f32 0.00390625, %v591_v6 }
 0x2a1   :  { %v593_v8 = vadd.f32 1e-05, %v592_v7 }
 0x2a3   :  { %746 = vrsqrt.f32 %v593_v8  ;;  %vm600_vm12 = vweird.f32 %v593_v8 }
 0x2a9   :  { %v747_v9 = vpop.eup %746 }
 0x2aa   :  { %v595_v10 = vmul.f32 %v747_v9, %v593_v8  ;;  %vm601_vm11 = vweird.f32 %v747_v9 }
 0x2ab   :  { %v633_v12 = vpop.xlane.xlu2 %632  ;;  %vm602_vm13 = vmor %vm600_vm12, %vm601_vm11 }
 0x2ac   :  { %v596_v11 = vmul.f32 %v747_v9, %v595_v10  ;;  %v634_v13 = vmul.f32 0.00390625, %v633_v12 }
 0x2ae   :  { %v597_v14 = vmul.f32 0.5, %v596_v11  ;;  %v635_v15 = vadd.f32 1e-05, %v634_v13 }
 0x2b0   :  { %v598_v16 = vsub.f32 1.5, %v597_v14  ;;  %748 = vrsqrt.f32 %v635_v15  ;;  %vm642_vm15 = vweird.f32 %v635_v15 }
 0x2b2   :  { %v599_v17 = vmul.f32 %v747_v9, %v598_v16 }
 0x2b4   :  { %v603_v18 = vsel %vm602_vm13, %v747_v9, %v599_v17 }
 0x2b5   :  { %v604_v19 = vmul.f32 %v603_v18, %v579_v46  ;;  %v605_v20 = vmul.f32 %v603_v18, %v580_v47  ;;  %v606_v21 = vmul.f32 %v603_v18, %v581_v48 }
 0x2b6   :  { %v749_v22 = vpop.eup %748 }
 0x2b7   :  { %v607_v23 = vmax.f32 %v604_v19, 0.0  ;;  %v608_v24 = vmax.f32 %v605_v20, 0.0  ;;  %v609_v25 = vmax.f32 %v606_v21, 0.0  ;;  %v637_v26 = vmul.f32 %v749_v22, %v635_v15 }
 0x2b8   :  { %vm643_vm14 = vweird.f32 %v749_v22 }
 0x2b9   :  { %610 = vst [vmem:[%s935_s3] sm:$0xff] %v607_v23  ;;  %v638_v27 = vmul.f32 %v749_v22, %v637_v26  ;;  %vm644_vm0 = vmor %vm642_vm15, %vm643_vm14 }
 0x2ba   :  { %611 = vst [vmem:[%s935_s3 + $0x8] sm:$0xff] %v608_v24 }
 0x2bb   :  { %612 = vst [vmem:[%s935_s3 + $0x10] sm:$0xff] %v609_v25  ;;  %v639_v28 = vmul.f32 0.5, %v638_v27 }
 0x2bd   :  { %v640_v29 = vsub.f32 1.5, %v639_v28 }
 0x2bf   :  { %v641_v30 = vmul.f32 %v749_v22, %v640_v29 }
 0x2c1   :  { %v645_v31 = vsel %vm644_vm0, %v749_v22, %v641_v30 }
 0x2c2   :  { %v646_v32 = vmul.f32 %v645_v31, %v621_v59  ;;  %v647_v33 = vmul.f32 %v645_v31, %v622_v60  ;;  %v648_v34 = vmul.f32 %v645_v31, %v623_v61 }
 0x2c4   :  { %v649_v35 = vmax.f32 %v646_v32, 0.0  ;;  %v650_v36 = vmax.f32 %v647_v33, 0.0  ;;  %v651_v37 = vmax.f32 %v648_v34, 0.0 }
 0x2c6   :  { %723 = vst [vmem:[%s935_s3 + $0x18] sm:$0xff] %v649_v35 }
 0x2c7   :  { %724 = vst [vmem:[%s935_s3 + $0x20] sm:$0xff] %v650_v36 }
 0x2c8   :  { %725 = vst [vmem:[%s935_s3 + $0x28] sm:$0xff] %v651_v37 }

</bundles_post_ra>
